<compile_context>
chip_gen: v7x
topology: tpu7x:2x2x1
jax: 0.10.0
libtpu: 0.0.40
codegen_flags: <defaults>
</compile_context>

<pallas_src>
import jax
import jax.numpy as jnp
from jax.experimental import pallas as pl
from jax.experimental.pallas import tpu as pltpu


def _round_up(n, m):
    return ((n + m - 1) // m) * m


def categorical_head_kernel(x_ref, w_ref, b_ref, logits_ref, probs_ref):
    # Cast the f32 x tile to bf16 on the VPU (free under DMA/MXU); MXU matmul
    # with f32 accumulation.
    x = x_ref[...].astype(jnp.bfloat16)
    raw = jnp.dot(x, w_ref[...], preferred_element_type=jnp.float32)
    raw = raw + b_ref[...]                      # (1, a_pad) broadcast; padded lanes = -1e30

    # Numerically stable softmax / log-softmax over the padded lane dim (f32).
    m = jnp.max(raw, axis=-1, keepdims=True)
    shifted = raw - m
    e = jnp.exp(shifted)                        # padded lanes underflow to exactly 0
    s = jnp.sum(e, axis=-1, keepdims=True)
    log_z = jnp.log(s)
    inv_s = pl.reciprocal(s, approx=True)       # EUP slot, ~1e-3 rel. error on probs

    a = logits_ref.shape[-1]                    # true number of actions (lane-sliced store)
    logits_ref[...] = (shifted[:, :a] - log_z).astype(logits_ref.dtype)
    probs_ref[...] = (e[:, :a] * inv_s).astype(probs_ref.dtype)


def prepare_categorical_head_params(w, b):
    """Pad + cast parameters ONCE (hoisted out of the per-step forward path).

    w: (D, A) f32, b: (A,) f32 -> w_p: (D, a_pad) bf16, b_p: (1, a_pad) f32.
    Padded weight columns are 0, padded bias lanes are -1e30 so the softmax over
    the padded slab equals the softmax over the real A lanes.
    """
    D, A = w.shape
    a_pad = _round_up(A, 128)
    w_p = jnp.zeros((D, a_pad), jnp.bfloat16).at[:, :A].set(w.astype(jnp.bfloat16))
    b_p = jnp.full((1, a_pad), -1e30, jnp.float32).at[0, :A].set(b.astype(jnp.float32))
    return w_p, b_p


def categorical_head(x, w_p, b_p, num_actions, *, tb=512):
    """x: (B, D) f32 (unpadded), prepared params from prepare_categorical_head_params.

    Returns (normalized_logits, probs), each (B, num_actions) f32.
    """
    B, D = x.shape
    a_pad = w_p.shape[1]
    A = num_actions

    # Large batch tile for HBM efficiency, but keep >= 2 grid steps (v7x has 2
    # TensorCores; a 1-step grid would idle one of them), multiple of 8 rows.
    tb_eff = max(8, min(tb, _round_up(pl.cdiv(B, 2), 8)))
    grid = (pl.cdiv(B, tb_eff),)

    cost = pl.CostEstimate(
        flops=2 * B * D * a_pad + 6 * B * a_pad,
        transcendentals=2 * B * a_pad,
        bytes_accessed=B * D * 4 + D * a_pad * 2 + a_pad * 4 + 2 * B * A * 4,
    )

    logits, probs = pl.pallas_call(
        categorical_head_kernel,
        grid=grid,
        out_shape=(
            jax.ShapeDtypeStruct((B, A), jnp.float32),
            jax.ShapeDtypeStruct((B, A), jnp.float32),
        ),
        in_specs=[
            pl.BlockSpec((tb_eff, D), lambda i: (i, 0)),      # x tile streams over batch
            pl.BlockSpec((D, a_pad), lambda i: (0, 0)),       # W resident in VMEM
            pl.BlockSpec((1, a_pad), lambda i: (0, 0)),       # bias resident in VMEM
        ],
        out_specs=(
            pl.BlockSpec((tb_eff, A), lambda i: (i, 0)),      # true-width output (no padded writeback)
            pl.BlockSpec((tb_eff, A), lambda i: (i, 0)),
        ),
        compiler_params=pltpu.CompilerParams(
            dimension_semantics=("parallel",),                # megacore sharding of the batch grid
            vmem_limit_bytes=32 * 1024 * 1024,
        ),
        cost_estimate=cost,
    )(x, w_p, b_p)

    return logits, probs


def orthogonal_init(key, shape, gain):
    """Deterministic orthogonal init matching torch.nn.init.orthogonal_ semantics."""
    rows, cols = shape
    flat = jax.random.normal(key, (rows, cols), dtype=jnp.float32)
    if rows < cols:
        flat = flat.T
    q, r = jnp.linalg.qr(flat)
    d = jnp.sign(jnp.diagonal(r))
    q = q * d[None, :]
    if rows < cols:
        q = q.T
    return gain * q


if __name__ == "__main__":
    # Small but grid-exercising sizes: B=200 -> 2 batch tiles of 104 rows.
    B, D, A = 200, 64, 16  # batch, input_size, num_actions

    key = jax.random.PRNGKey(0)
    kx, kw = jax.random.split(key)

    # Parameters: orthogonal init with gain=0.01 on (num_actions, input_size), zero bias.
    w_torch_layout = orthogonal_init(kw, (A, D), gain=0.01)   # nn.Linear stores (out, in)
    w = w_torch_layout.T                                      # kernel uses (D, A)
    b = jnp.zeros((A,), dtype=jnp.float32)

    # Pad/cast params once (hoisted out of the forward path).
    w_p, b_p = prepare_categorical_head_params(w, b)

    x = jax.random.normal(kx, (B, D), dtype=jnp.float32)

    logits, probs = categorical_head(x, w_p, b_p, A)
    jax.block_until_ready((logits, probs))

    # Reference uses the same bf16 operand rounding the kernel sees (f32 accumulation).
    xb = x.astype(jnp.bfloat16).astype(jnp.float32)
    wb = w.astype(jnp.bfloat16).astype(jnp.float32)
    ref_raw = xb @ wb + b
    ref_logits = jax.nn.log_softmax(ref_raw, axis=-1)
    ref_probs = jax.nn.softmax(ref_raw, axis=-1)

    assert logits.shape == (B, A) and probs.shape == (B, A), "bad output shape"
    assert jnp.allclose(logits, ref_logits, atol=1e-3), "logits mismatch"
    # approx=True reciprocal -> ~1e-3 relative error budget on probs
    assert jnp.allclose(probs, ref_probs, atol=3e-3), "probs mismatch"
    assert jnp.allclose(jnp.sum(probs, axis=-1), 1.0, atol=3e-3), "probs not normalized"

    print("KERNEL_OK")
</pallas_src>

<mosaic_0001>
module attributes {stable_mosaic.version = 11 : i64} {
  func.func @categorical_head_kernel(%arg0: i32, %arg1: memref<104x64xf32, #tpu.memory_space<vmem>>, %arg2: memref<64x128xbf16, #tpu.memory_space<vmem>>, %arg3: memref<1x128xf32, #tpu.memory_space<vmem>>, %arg4: memref<104x16xf32, #tpu.memory_space<vmem>>, %arg5: memref<104x16xf32, #tpu.memory_space<vmem>>) attributes {dimension_semantics = [#tpu.dimension_semantics<parallel>], iteration_bounds = array<i64: 2>, scalar_prefetch = 0 : i64, scratch_operands = 0 : i64, tpu.core_type = #tpu.core_type<tc>, window_params = [{transform_indices = @transform_0, window_bounds = array<i64: 104, 64>}, {pipeline_mode = #tpu.pipeline_mode<synchronous>, transform_indices = @transform_1, window_bounds = array<i64: 64, 128>}, {pipeline_mode = #tpu.pipeline_mode<synchronous>, transform_indices = @transform_2, window_bounds = array<i64: 1, 128>}, {transform_indices = @transform_3, window_bounds = array<i64: 104, 16>}, {transform_indices = @transform_4, window_bounds = array<i64: 104, 16>}]} {
    %c0 = arith.constant 0 : index
    %c0_0 = arith.constant 0 : index
    %0 = vector.load %arg1[%c0, %c0_0] : memref<104x64xf32, #tpu.memory_space<vmem>>, vector<104x64xf32>
    %1 = arith.truncf %0 : vector<104x64xf32> to vector<104x64xbf16>
    %c0_1 = arith.constant 0 : index
    %c0_2 = arith.constant 0 : index
    %2 = vector.load %arg2[%c0_1, %c0_2] : memref<64x128xbf16, #tpu.memory_space<vmem>>, vector<64x128xbf16>
    %cst = arith.constant dense<0.000000e+00> : vector<104x128xf32>
    %3 = tpu.matmul %1, %2, %cst {dimension_numbers = #tpu.dot_dimension_numbers<[1], [0], [0], [1], [0, 0, 1, 1], [], []>} : vector<104x64xbf16>, vector<64x128xbf16>, vector<104x128xf32> -> vector<104x128xf32>
    %c0_3 = arith.constant 0 : index
    %c0_4 = arith.constant 0 : index
    %4 = vector.load %arg3[%c0_3, %c0_4] : memref<1x128xf32, #tpu.memory_space<vmem>>, vector<1x128xf32>
    %5 = vector.broadcast %4 : vector<1x128xf32> to vector<104x128xf32>
    %6 = arith.addf %3, %5 : vector<104x128xf32>
    %cst_5 = arith.constant dense<0xFF800000> : vector<104xf32>
    %7 = vector.multi_reduction <maximumf>, %6, %cst_5 [1] : vector<104x128xf32> to vector<104xf32>
    %8 = vector.shape_cast %7 : vector<104xf32> to vector<104x1xf32>
    %9 = vector.broadcast %8 : vector<104x1xf32> to vector<104x128xf32>
    %10 = arith.subf %6, %9 : vector<104x128xf32>
    %11 = math.exp %10 : vector<104x128xf32>
    %cst_6 = arith.constant dense<0.000000e+00> : vector<104xf32>
    %12 = vector.multi_reduction <add>, %11, %cst_6 [1] : vector<104x128xf32> to vector<104xf32>
    %13 = vector.shape_cast %12 : vector<104xf32> to vector<104x1xf32>
    %14 = math.log %13 : vector<104x1xf32>
    %15 = tpu.reciprocal %13 {approx = true} : vector<104x1xf32> -> vector<104x1xf32>
    %16 = vector.extract_strided_slice %10 {offsets = [0, 0], sizes = [104, 16], strides = [1, 1]} : vector<104x128xf32> to vector<104x16xf32>
    %17 = vector.broadcast %14 : vector<104x1xf32> to vector<104x16xf32>
    %18 = arith.subf %16, %17 : vector<104x16xf32>
    %c0_7 = arith.constant 0 : index
    %c0_8 = arith.constant 0 : index
    %19 = vector.load %arg4[%c0_7, %c0_8] : memref<104x16xf32, #tpu.memory_space<vmem>>, vector<104x16xf32>
    tpu.vector_store %arg4[%c0_7, %c0_8], %18 {strides = array<i32>} : memref<104x16xf32, #tpu.memory_space<vmem>>, vector<104x16xf32>,
    %20 = vector.extract_strided_slice %11 {offsets = [0, 0], sizes = [104, 16], strides = [1, 1]} : vector<104x128xf32> to vector<104x16xf32>
    %21 = vector.broadcast %15 : vector<104x1xf32> to vector<104x16xf32>
    %22 = arith.mulf %20, %21 : vector<104x16xf32>
    %c0_9 = arith.constant 0 : index
    %c0_10 = arith.constant 0 : index
    %23 = vector.load %arg5[%c0_9, %c0_10] : memref<104x16xf32, #tpu.memory_space<vmem>>, vector<104x16xf32>
    tpu.vector_store %arg5[%c0_9, %c0_10], %22 {strides = array<i32>} : memref<104x16xf32, #tpu.memory_space<vmem>>, vector<104x16xf32>,
    return
  }
  func.func @transform_0(%arg0: i32) -> (i32, i32) {
    %c0_i32 = arith.constant 0 : i32
    %c0_i32_0 = arith.constant 0 : i32
    return %arg0, %c0_i32 : i32, i32
  }
  func.func @transform_1(%arg0: i32) -> (i32, i32) {
    %c0_i32 = arith.constant 0 : i32
    %c0_i32_0 = arith.constant 0 : i32
    %c0_i32_1 = arith.constant 0 : i32
    return %c0_i32, %c0_i32_0 : i32, i32
  }
  func.func @transform_2(%arg0: i32) -> (i32, i32) {
    %c0_i32 = arith.constant 0 : i32
    %c0_i32_0 = arith.constant 0 : i32
    %c0_i32_1 = arith.constant 0 : i32
    return %c0_i32, %c0_i32_0 : i32, i32
  }
  func.func @transform_3(%arg0: i32) -> (i32, i32) {
    %c0_i32 = arith.constant 0 : i32
    %c0_i32_0 = arith.constant 0 : i32
    return %arg0, %c0_i32 : i32, i32
  }
  func.func @transform_4(%arg0: i32) -> (i32, i32) {
    %c0_i32 = arith.constant 0 : i32
    %c0_i32_0 = arith.constant 0 : i32
    return %arg0, %c0_i32 : i32, i32
  }
}

</mosaic_0001>

<bundles_post_ra>
// kernel: tpu_custom_call.1
= control target key start
LH: loop header
LB: loop body
LE: loop exit
PB: predicated region body
PF: predicated region fallthrough
CT: control target
= control target key end

     0   :  { %s1613_s15 = smov 0   ;;  %s1615_s16 = smov 0   ;;  %s2027_s0 = inlined_call_operand.vmem [shape: f32[200,64], index: 0, kind: input, shape index: {}]   ;;  %s2028_s1 = inlined_call_operand.vmem [shape: bf16[64,128], index: 1, kind: input, shape index: {}]   ;;  %s2029_s2 = inlined_call_operand.vmem [shape: f32[1,128], index: 2, kind: input, shape index: {}]   ;;  %s2030_s3 = inlined_call_operand.vmem [shape: f32[200,16], index: 3, kind: output, shape index: {0}]   ;;  %s2031_s4 = inlined_call_operand.vmem [shape: f32[200,16], index: 4, kind: output, shape index: {1}]  }
   0x1   :  { %s1617_s17 = smov 0  }
   0x2 LB: > { %s1626_s18 = sadd.s32 4294967295, %s1520_s17   ;;  %s1628_s19 = sadd.s32 1, %s1520_s17   ;;  %s1520_s17 = sphi %s1617_s17, %s2041_s17   ;;  %s1516_s16 = sphi %s1615_s16, %s2040_s16   ;;  %s1512_s15 = sphi %s1613_s15, %s2039_s15  }
   0x3   : > { %s87_s20 = ssub.s32 %s1520_s17, %s1628_s19  ;;  %s90_s21 = sadd.s32 1, %s1516_s16 }
   0x4   : > { %p88_p0 = scmp.eq.s32.totalorder %s87_s20, 0  ;;  %p100_p1 = scmp.ne.s32.totalorder %s1516_s16, %s1512_s15 }
   0x5   : > { %p101_p2 = scmp.eq.s32.totalorder %s1626_s18, 1  ;;  %p1094_p3 = scmp.ge.s32.totalorder %s1520_s17, 1 }
   0x6   : > { %s1636_s22 = scalar_select %p88_p0, %s1516_s16, %s90_s21  }
   0x7   : > { %p1638_p4 = por %p101_p2, %p100_p1  ;;  %p174_p5 = scmp.lt.s32.totalorder %s1520_s17, 3 }
   0x9   : > { %p175_p6 = pnand %p1094_p3, %p174_p5 }
   0xa   : > { %v1344_v0 = vld [vmem:[%s2028_s1] sm:$0xff] (!%p175_p6)   ;;  %v1586_v1 = vmov (!%p175_p6), 0.0   ;;  %v1345_v2 = vld [vmem:[%s2028_s1 + $0x8] sm:$0xff] (!%p175_p6)   ;;  %s1649_s28 = smul.u32 (!%p175_p6), 13, %s1626_s18  ;;  %vm1587_vm0 = vmmov (!%p175_p6), 0   ;;  %v1346_v3 = vld [vmem:[%s2028_s1 + $0x10] sm:$0xff] (!%p175_p6)  }
   0xb   : > { %178 = sbr.rel (%p175_p6) target bundleno = 715 (0x2cb), region = 32  ;;  %1143 = vmatprep.subr.bf16.mxu0 (!%p175_p6), %v1586_v1  ;;  %1179 = vmatprep.subr.bf16.mxu1 (!%p175_p6), %v1586_v1  ;;  %v1347_v4 = vld [vmem:[%s2028_s1 + $0x18] sm:$0xff] (!%p175_p6)   ;;  %vm291_vm1 = vcmask (!%p175_p6), 523264   ;;  %v1096_v25 = vld [vmem:[%s2029_s2] ss:$0 sm:$0xff] (!%p175_p6)  ;;  %s198_s14 = sand.u32 (!%p175_p6), 1, %s1512_s15  }
   0xc   : > { %1144 = vmatpush3.bf16.msra.mxu0 (!%p175_p6), %v1344_v0  ;;  %1183 = vmatpush3.bf16.msra.mxu1 (!%p175_p6), %v1344_v0  ;;  %p212_p7 = scmp.lt.s32.totalorder (!%p175_p6), %s1649_s28, 24  ;;  %s1187_s17 = smul.u32 (!%p175_p6), 104, %s198_s14  ;;  %vm544_vm2 = vcmask (!%p175_p6), 130048  }
   0xd   : > { %1145 = vmatprep.subr.bf16.mxu0 (!%p175_p6), %v1586_v1  ;;  %1180 = vmatprep.subr.bf16.mxu1 (!%p175_p6), %v1586_v1 }
   0xe   : > { %1151 = vmatprep.mubr.msk.bf16.mxu0 (!%p175_p6), %vm1587_vm0, %v1586_v1  ;;  %1167 = vmatprep.mubr.msk.bf16.mxu1 (!%p175_p6), %vm1587_vm0, %v1586_v1  ;;  %s1779_s15 = scalar_lea.vmem (!%p175_p6), [#allocation3], %s1187_s17   ;;  %s1783_s20 = scalar_lea.vmem (!%p175_p6), [#allocation2], %s1187_s17  }
  0x10   : > { %1146 = vmatpush3.bf16.msra.mxu0 (!%p175_p6), %v1345_v2  ;;  %1184 = vmatpush3.bf16.msra.mxu1 (!%p175_p6), %v1345_v2 }
  0x11   : > { %1147 = vmatprep.subr.bf16.mxu0 (!%p175_p6), %v1586_v1  ;;  %1181 = vmatprep.subr.bf16.mxu1 (!%p175_p6), %v1586_v1 }
  0x12   : > { %s213_s5 = scalar_select %p212_p7, %s1649_s28, 24 }
  0x13   : > { %s596_s21 = ssub.s32 (%p1638_p4), 25, %s1649_s28  ;;  %s1130_s24 = smul.u32 (%p1638_p4), 104, %s1626_s18 }
  0x14   : > { %s1095_s6 = sshll.u32 %s213_s5, 3  ;;  %1148 = vmatpush3.bf16.msra.mxu0 %v1346_v3  ;;  %1185 = vmatpush3.bf16.msra.mxu1 %v1346_v3  ;;  %p597_p8 = scmp.lt.s32.totalorder (%p1638_p4), %s596_s21, 13 }
  0x15   : > { %s1664_s11 = scalar_lea.vmem %s2027_s0, %s1095_s6  ;;  %1149 = vmatprep.subr.bf16.mxu0 %v1586_v1  ;;  %1182 = vmatprep.subr.bf16.mxu1 %v1586_v1  ;;  %s1866_s27 = scalar_lea.vmem (%p1638_p4), %s2030_s3, %s1130_s24  }
  0x16   : > { %v232_v5 = vld [vmem:[%s1664_s11] sm:$0xff]  ;;  %v233_v6 = vld [vmem:[%s1664_s11 + $0x8] sm:$0xff]  ;;  %v234_v11 = vld [vmem:[%s1664_s11 + $0x10] sm:$0xff] }
  0x17   : > { %v240_v7 = vld [vmem:[%s1664_s11 + $0x40] sm:$0xff]  ;;  %v241_v8 = vld [vmem:[%s1664_s11 + $0x48] sm:$0xff]  ;;  %v245_v9 = vpack.c.bf16 %v233_v6, %v232_v5  ;;  %v235_v12 = vld [vmem:[%s1664_s11 + $0x18] sm:$0xff] }
  0x18   : > { %v249_v10 = vpack.c.bf16 %v241_v8, %v240_v7  ;;  %1150 = vmatpush3.bf16.msra.mxu0 %v1347_v4  ;;  %1186 = vmatpush3.bf16.msra.mxu1 %v1347_v4  ;;  %v242_v13 = vld [vmem:[%s1664_s11 + $0x50] sm:$0xff]  ;;  %v243_v14 = vld [vmem:[%s1664_s11 + $0x58] sm:$0xff]  ;;  %v246_v15 = vpack.c.bf16 %v235_v12, %v234_v11  ;;  %v236_v17 = vld [vmem:[%s1664_s11 + $0x20] sm:$0xff] }
  0x19   : > { %v250_v16 = vpack.c.bf16 %v243_v14, %v242_v13  ;;  %v237_v18 = vld [vmem:[%s1664_s11 + $0x28] sm:$0xff]  ;;  %v244_v19 = vld [vmem:[%s1664_s11 + $0x60] sm:$0xff]  ;;  %v238_v22 = vld [vmem:[%s1664_s11 + $0x30] sm:$0xff] }
  0x1a   : > { %v247_v20 = vpack.c.bf16 %v237_v18, %v236_v17  ;;  %v251_v21 = vpack.c.bf16 %v244_v19, %v244_v19  ;;  %v239_v23 = vld [vmem:[%s1664_s11 + $0x38] sm:$0xff] }
  0x1b   : > { %1152 = vmatmul.mubr.msk.bf16.vlgmr.msra.gmra.mrb[0].mxu0 %vm291_vm1, %v245_v9  ;;  %1168 = vmatmul.mubr.msk.bf16.vlgmr.msra.gmra.mrb[0].mxu1 %vm291_vm1, %v249_v10  ;;  %v248_v24 = vpack.c.bf16 %v239_v23, %v238_v22 }
  0x1c   : > { %1155 = vmatprep.mubr.msk.bf16.mxu0 %vm1587_vm0, %v1586_v1  ;;  %1171 = vmatprep.mubr.msk.bf16.mxu1 %vm1587_vm0, %v1586_v1 }
  0x23   : > { %1156 = vmatmul.mubr.msk.bf16.gmra.mrb[4].mxu0 %vm291_vm1, %v246_v15  ;;  %1172 = vmatmul.mubr.msk.bf16.gmra.mrb[4].mxu1 %vm291_vm1, %v250_v16 }
  0x24   : > { %1159 = vmatprep.mubr.msk.bf16.mxu0 %vm1587_vm0, %v1586_v1  ;;  %1175 = vmatprep.mubr.msk.bf16.mxu1 %vm1587_vm0, %v1586_v1 }
  0x2b   : > { %1160 = vmatmul.mubr.msk.bf16.gmra.mrb[8].mxu0 %vm291_vm1, %v247_v20  ;;  %1176 = vmatmul.mubr.msk.bf16.gmra.mrb[8].mxu1 %vm291_vm1, %v251_v21 }
  0x2c   : > { %1163 = vmatprep.mubr.msk.bf16.mxu0 %vm1587_vm0, %v1586_v1 }
  0x33   : > { %1164 = vmatmul.mubr.msk.bf16.gmra.mrb[12].mxu0 %vm291_vm1, %v248_v24 }
  0xee   : > { %v347_v26 = vpop.f32.mrb[0].mxu0  ;;  %v379_v27 = vpop.f32.mrb[0].mxu1 }
  0xef   : > { %v348_v28 = vadd.f32 %v1096_v25, %v347_v26  ;;  %v1153_v29 = vpop.f32.mrb[1].mxu0  ;;  %v1169_v30 = vpop.f32.mrb[1].mxu1  ;;  %v380_v33 = vadd.f32 %v1096_v25, %v379_v27 }
  0xf0   : > { %v350_v31 = vpop.f32.mrb[2].mxu0  ;;  %v382_v32 = vpop.f32.mrb[2].mxu1 }
  0xf1   : > { %v383_v34 = vadd.f32 %v1096_v25, %v382_v32  ;;  %401 = vmax.xlane.f32.xlu0 %v348_v28  ;;  %v1154_v35 = vpop.f32.mrb[3].mxu0  ;;  %v1170_v36 = vpop.f32.mrb[3].mxu1  ;;  %v351_v39 = vadd.f32 %v1096_v25, %v350_v31 }
  0xf3   : > { %419 = vmax.xlane.f32.xlu1 %v383_v34 }
  0xf5   : > { %417 = vmax.xlane.f32.xlu0 %v380_v33 }
  0xf6   : > { %v355_v37 = vpop.f32.mrb[4].mxu0  ;;  %v387_v38 = vpop.f32.mrb[4].mxu1 }
  0xf7   : > { %v356_v40 = vadd.f32 %v1096_v25, %v355_v37  ;;  %v1157_v41 = vpop.f32.mrb[5].mxu0  ;;  %v1173_v42 = vpop.f32.mrb[5].mxu1  ;;  %v388_v46 = vadd.f32 %v1096_v25, %v387_v38 }
  0xf8   : > { %v358_v43 = vpop.f32.mrb[6].mxu0  ;;  %v390_v44 = vpop.f32.mrb[6].mxu1 }
  0xf9   : > { %403 = vmax.xlane.f32.xlu0 %v351_v39  ;;  %405 = vmax.xlane.f32.xlu1 %v356_v40  ;;  %v1158_v45 = vpop.f32.mrb[7].mxu0  ;;  %v1174_v47 = vpop.f32.mrb[7].mxu1  ;;  %v359_v48 = vadd.f32 %v1096_v25, %v358_v43  ;;  %v1694_v2 = vadd.f32 %v1096_v25, %v390_v44 }
  0xfd   : > { %421 = vmax.xlane.f32.xlu0 %v388_v46  ;;  %407 = vmax.xlane.f32.xlu1 %v359_v48 }
  0xfe   : > { %v363_v49 = vpop.f32.mrb[8].mxu0  ;;  %v395_v50 = vpop.f32.mrb[8].mxu1 }
  0xff   : > { %v364_v51 = vadd.f32 %v1096_v25, %v363_v49  ;;  %v1161_v52 = vpop.f32.mrb[9].mxu0  ;;  %v1177_v53 = vpop.f32.mrb[9].mxu1  ;;  %v396_v0 = vadd.f32 %v1096_v25, %v395_v50 }
 0x100   : > { %v366_v54 = vpop.f32.mrb[10].mxu0  ;;  %v398_v55 = vpop.f32.mrb[10].mxu1 }
 0x101   : > { %v367_v56 = vadd.f32 %v1096_v25, %v366_v54  ;;  %409 = vmax.xlane.f32.xlu0 %v364_v51  ;;  %v1162_v57 = vpop.f32.mrb[11].mxu0  ;;  %v1178_v58 = vpop.f32.mrb[11].mxu1 }
 0x103   : > { %411 = vmax.xlane.f32.xlu1 %v367_v56 }
 0x106   : > { %v371_v59 = vpop.f32.mrb[12].mxu0 }
 0x107   : > { %v372_v60 = vadd.f32 %v1096_v25, %v371_v59  ;;  %v1165_v61 = vpop.f32.mrb[13].mxu0 }
 0x108   : > { %v374_v62 = vpop.f32.mrb[14].mxu0 }
 0x109   : > { %v375_v63 = vadd.f32 %v1096_v25, %v374_v62  ;;  %413 = vmax.xlane.f32.xlu0 %v372_v60  ;;  %v1166_v1 = vpop.f32.mrb[15].mxu0 }
 0x10b   : > { %415 = vmax.xlane.f32.xlu1 %v375_v63 }
 0x10d   : > { %425 = vmax.xlane.f32.xlu0 %v396_v0 }
 0x10f   : > { %423 = vmax.xlane.f32.xlu1 %v1694_v2 }
 0x17e   : > { %v402_v3 = vpop.xlane.xlu0 %401 }
 0x17f   : > { %v1697_v4 = vsub.f32 %v348_v28, %v402_v3 }
 0x180   : > { %v420_v6 = vpop.xlane.xlu1 %419 }
 0x181   : > { %v440_v5 = vmul.f32 1.442695, %v1697_v4  ;;  %v1703_v10 = vsub.f32 %v383_v34, %v420_v6 }
 0x182   : > { %v418_v7 = vpop.xlane.xlu0 %417 }
 0x183   : > { %1348 = vpow2.f32 %v440_v5  ;;  %v1700_v8 = vsub.f32 %v380_v33, %v418_v7  ;;  %v458_v17 = vmul.f32 1.442695, %v1703_v10 }
 0x185   : > { %v456_v9 = vmul.f32 1.442695, %v1700_v8 }
 0x186   : > { %v404_v11 = vpop.xlane.xlu0 %403  ;;  %v406_v12 = vpop.xlane.xlu1 %405 }
 0x187   : > { %1350 = vpow2.f32 %v456_v9  ;;  %v1705_v13 = vsub.f32 %v351_v39, %v404_v11  ;;  %v1707_v14 = vsub.f32 %v356_v40, %v406_v12 }
 0x189   : > { %v442_v15 = vmul.f32 1.442695, %v1705_v13  ;;  %v444_v16 = vmul.f32 1.442695, %v1707_v14 }
 0x18a   : > { %v422_v18 = vpop.xlane.xlu0 %421  ;;  %v408_v19 = vpop.xlane.xlu1 %407 }
 0x18b   : > { %1352 = vpow2.f32 %v442_v15  ;;  %v1712_v20 = vsub.f32 %v388_v46, %v422_v18  ;;  %v1714_v21 = vsub.f32 %v359_v48, %v408_v19 }
 0x18c   : > { %1354 = vpow2.f32 %v444_v16 }
 0x18d   : > { %v1716_v22 = vpop.eup %1348  ;;  %v460_v23 = vmul.f32 1.442695, %v1712_v20  ;;  %1356 = vpow2.f32 %v458_v17  ;;  %v446_v24 = vmul.f32 1.442695, %v1714_v21 }
 0x18e   : > { %v410_v25 = vpop.xlane.xlu0 %409  ;;  %466 = vadd.xlane.f32.xlu1 %v1716_v22 }
 0x18f   : > { %1358 = vpow2.f32 %v460_v23  ;;  %v1721_v26 = vsub.f32 %v364_v51, %v410_v25 }
 0x190   : > { %v412_v27 = vpop.xlane.xlu1 %411  ;;  %1360 = vpow2.f32 %v446_v24 }
 0x191   : > { %v1723_v28 = vpop.eup %1350  ;;  %v448_v29 = vmul.f32 1.442695, %v1721_v26  ;;  %v1726_v30 = vsub.f32 %v367_v56, %v412_v27 }
 0x192   : > { %482 = vadd.xlane.f32.xlu1 %v1723_v28 }
 0x193   : > { %1362 = vpow2.f32 %v448_v29  ;;  %v450_v31 = vmul.f32 1.442695, %v1726_v30 }
 0x195   : > { %v1730_v32 = vpop.eup %1352  ;;  %1364 = vpow2.f32 %v450_v31 }
 0x196   : > { %v1732_v33 = vpop.eup %1354  ;;  %468 = vadd.xlane.f32.xlu0 %v1730_v32  ;;  %v414_v34 = vpop.xlane.xlu0 %413 }
 0x197   : > { %v1735_v35 = vsub.f32 %v372_v60, %v414_v34  ;;  %470 = vadd.xlane.f32.xlu1 %v1732_v33  ;;  %v1738_v36 = vpop.eup %1356 }
 0x198   : > { %v416_v37 = vpop.xlane.xlu1 %415 }
 0x199   : > { %v1740_v38 = vpop.eup %1358  ;;  %v452_v39 = vmul.f32 1.442695, %v1735_v35  ;;  %v1743_v40 = vsub.f32 %v375_v63, %v416_v37 }
 0x19a   : > { %484 = vadd.xlane.f32.xlu0 %v1738_v36  ;;  %v426_v41 = vpop.xlane.xlu0 %425  ;;  %v1750_v44 = vpop.eup %1360 }
 0x19b   : > { %1366 = vpow2.f32 %v452_v39  ;;  %v454_v42 = vmul.f32 1.442695, %v1743_v40  ;;  %v1747_v43 = vsub.f32 %v396_v0, %v426_v41  ;;  %486 = vadd.xlane.f32.xlu1 %v1740_v38 }
 0x19c   : > { %v424_v45 = vpop.xlane.xlu1 %423 }
 0x19d   : > { %v1752_v46 = vpop.eup %1362  ;;  %1368 = vpow2.f32 %v454_v42  ;;  %v464_v47 = vmul.f32 1.442695, %v1747_v43  ;;  %v1756_v48 = vsub.f32 %v1694_v2, %v424_v45 }
 0x19e   : > { %472 = vadd.xlane.f32.xlu0 %v1750_v44 }
 0x19f   : > { %1370 = vpow2.f32 %v464_v47  ;;  %v462_v49 = vmul.f32 1.442695, %v1756_v48  ;;  %474 = vadd.xlane.f32.xlu1 %v1752_v46  ;;  %v1761_v50 = vpop.eup %1364 }
 0x1a1   : > { %1372 = vpow2.f32 %v462_v49 }
 0x1a2   : > { %476 = vadd.xlane.f32.xlu0 %v1761_v50 }
 0x1a5   : > { %v1764_v51 = vpop.eup %1366 }
 0x1a6   : > { %478 = vadd.xlane.f32.xlu1 %v1764_v51 }
 0x1a7   : > { %v1767_v52 = vpop.eup %1368 }
 0x1a8   : > { %480 = vadd.xlane.f32.xlu0 %v1767_v52 }
 0x1a9   : > { %v1770_v53 = vpop.eup %1370 }
 0x1aa   : > { %490 = vadd.xlane.f32.xlu1 %v1770_v53 }
 0x1ab   : > { %v1773_v54 = vpop.eup %1372 }
 0x1ac   : > { %488 = vadd.xlane.f32.xlu0 %v1773_v54 }
 0x21b   : > { %v467_v55 = vpop.xlane.xlu1 %466 }
 0x21c   : > { %1374 = vlog2.f32 %v467_v55 }
 0x21d   : > { %1376 = vrcp.f32 %v467_v55 }
 0x21f   : > { %v483_v56 = vpop.xlane.xlu1 %482 }
 0x220   : > { %1378 = vlog2.f32 %v483_v56 }
 0x221   : > { %1380 = vrcp.f32 %v483_v56 }
 0x223   : > { %v469_v57 = vpop.xlane.xlu0 %468 }
 0x224   : > { %1382 = vlog2.f32 %v469_v57  ;;  %v471_v58 = vpop.xlane.xlu1 %470 }
 0x225   : > { %1384 = vrcp.f32 %v469_v57 }
 0x226   : > { %v1375_v59 = vpop.eup %1374  ;;  %1386 = vlog2.f32 %v471_v58 }
 0x227   : > { %v1377_v60 = vpop.eup %1376  ;;  %v493_v61 = vmul.f32 0.6931472, %v1375_v59  ;;  %1388 = vrcp.f32 %v471_v58  ;;  %v485_v62 = vpop.xlane.xlu0 %484 }
 0x228   : > { %v558_v63 = vmul.f32 %v1377_v60, %v1716_v22  ;;  %1390 = vlog2.f32 %v485_v62  ;;  %v487_v0 = vpop.xlane.xlu1 %486 }
 0x229   : > { %v531_v1 = vsub.f32 %v1697_v4, %v493_v61  ;;  %1392 = vrcp.f32 %v485_v62 }
 0x22a   : > { %v1379_v2 = vpop.eup %1378  ;;  %571 = vst.msk [vmem:[%s1779_s15] sm:$0xff] %vm544_vm2, %v558_v63  ;;  %1394 = vlog2.f32 %v487_v0 }
 0x22b   : > { %v1381_v3 = vpop.eup %1380  ;;  %545 = vst.msk [vmem:[%s1783_s20] sm:$0xff] %vm544_vm2, %v531_v1  ;;  %v509_v5 = vmul.f32 0.6931472, %v1379_v2  ;;  %1396 = vrcp.f32 %v487_v0  ;;  %v473_v6 = vpop.xlane.xlu0 %472 }
 0x22c   : > { %v566_v4 = vmul.f32 %v1381_v3, %v1723_v28  ;;  %1398 = vlog2.f32 %v473_v6  ;;  %v475_v7 = vpop.xlane.xlu1 %474 }
 0x22d   : > { %v539_v9 = vsub.f32 %v1700_v8, %v509_v5  ;;  %1400 = vrcp.f32 %v473_v6 }
 0x22e   : > { %v1383_v11 = vpop.eup %1382  ;;  %579 = vst.msk [vmem:[%s1779_s15 + $0x40] sm:$0xff] %vm544_vm2, %v566_v4  ;;  %1402 = vlog2.f32 %v475_v7 }
 0x22f   : > { %v1385_v12 = vpop.eup %1384  ;;  %553 = vst.msk [vmem:[%s1783_s20 + $0x40] sm:$0xff] %vm544_vm2, %v539_v9  ;;  %v495_v15 = vmul.f32 0.6931472, %v1383_v11  ;;  %1404 = vrcp.f32 %v475_v7  ;;  %v477_v16 = vpop.xlane.xlu0 %476 }
 0x230   : > { %v1387_v17 = vpop.eup %1386  ;;  %v559_v18 = vmul.f32 %v1385_v12, %v1730_v32  ;;  %1406 = vlog2.f32 %v477_v16 }
 0x231   : > { %v1389_v19 = vpop.eup %1388  ;;  %v532_v8 = vsub.f32 %v1705_v13, %v495_v15  ;;  %v497_v22 = vmul.f32 0.6931472, %v1387_v17  ;;  %1408 = vrcp.f32 %v477_v16 }
 0x232   : > { %v1391_v23 = vpop.eup %1390  ;;  %572 = vst.msk [vmem:[%s1779_s15 + $0x8] sm:$0xff] %vm544_vm2, %v559_v18  ;;  %v560_v24 = vmul.f32 %v1389_v19, %v1732_v33 }
 0x233   : > { %v1393_v25 = vpop.eup %1392  ;;  %546 = vst.msk [vmem:[%s1783_s20 + $0x8] sm:$0xff] %vm544_vm2, %v532_v8  ;;  %v533_v27 = vsub.f32 %v1707_v14, %v497_v22  ;;  %v511_v28 = vmul.f32 0.6931472, %v1391_v23  ;;  %v479_v29 = vpop.xlane.xlu1 %478 }
 0x234   : > { %v1395_v31 = vpop.eup %1394  ;;  %573 = vst.msk [vmem:[%s1779_s15 + $0x10] sm:$0xff] %vm544_vm2, %v560_v24  ;;  %v567_v13 = vmul.f32 %v1393_v25, %v1738_v36  ;;  %1410 = vlog2.f32 %v479_v29 }
 0x235   : > { %v1397_v32 = vpop.eup %1396  ;;  %547 = vst.msk [vmem:[%s1783_s20 + $0x10] sm:$0xff] %vm544_vm2, %v533_v27  ;;  %v540_v33 = vsub.f32 %v1703_v10, %v511_v28  ;;  %v513_v34 = vmul.f32 0.6931472, %v1395_v31  ;;  %1412 = vrcp.f32 %v479_v29  ;;  %v481_v37 = vpop.xlane.xlu0 %480 }
 0x236   : > { %v1399_v14 = vpop.eup %1398  ;;  %580 = vst.msk [vmem:[%s1779_s15 + $0x48] sm:$0xff] %vm544_vm2, %v567_v13  ;;  %v568_v39 = vmul.f32 %v1397_v32, %v1740_v38  ;;  %1414 = vlog2.f32 %v481_v37 }
 0x237   : > { %v1401_v41 = vpop.eup %1400  ;;  %554 = vst.msk [vmem:[%s1783_s20 + $0x48] sm:$0xff] %vm544_vm2, %v540_v33  ;;  %v541_v36 = vsub.f32 %v1712_v20, %v513_v34  ;;  %v499_v42 = vmul.f32 0.6931472, %v1399_v14  ;;  %1416 = vrcp.f32 %v481_v37  ;;  %v491_v45 = vpop.xlane.xlu1 %490 }
 0x238   : > { %v1403_v10 = vpop.eup %1402  ;;  %581 = vst.msk [vmem:[%s1779_s15 + $0x50] sm:$0xff] %vm544_vm2, %v568_v39  ;;  %v561_v47 = vmul.f32 %v1401_v41, %v1750_v44  ;;  %1418 = vlog2.f32 %v491_v45 }
 0x239   : > { %v1405_v49 = vpop.eup %1404  ;;  %555 = vst.msk [vmem:[%s1783_s20 + $0x50] sm:$0xff] %vm544_vm2, %v541_v36  ;;  %v534_v38 = vsub.f32 %v1714_v21, %v499_v42  ;;  %v501_v55 = vmul.f32 0.6931472, %v1403_v10  ;;  %1420 = vrcp.f32 %v491_v45  ;;  %v489_v20 = vpop.xlane.xlu0 %488 }
 0x23a   : > { %v1407_v56 = vpop.eup %1406  ;;  %574 = vst.msk [vmem:[%s1779_s15 + $0x18] sm:$0xff] %vm544_vm2, %v561_v47  ;;  %v562_v57 = vmul.f32 %v1405_v49, %v1752_v46  ;;  %1422 = vlog2.f32 %v489_v20 }
 0x23b   : > { %v1409_v44 = vpop.eup %1408  ;;  %548 = vst.msk [vmem:[%s1783_s20 + $0x18] sm:$0xff] %vm544_vm2, %v534_v38  ;;  %v535_v58 = vsub.f32 %v1721_v26, %v501_v55  ;;  %v503_v59 = vmul.f32 0.6931472, %v1407_v56  ;;  %1424 = vrcp.f32 %v489_v20 }
 0x23c   : > { %575 = vst.msk [vmem:[%s1779_s15 + $0x20] sm:$0xff] %vm544_vm2, %v562_v57  ;;  %v563_v21 = vmul.f32 %v1409_v44, %v1761_v50 }
 0x23d   : > { %549 = vst.msk [vmem:[%s1783_s20 + $0x20] sm:$0xff] %vm544_vm2, %v535_v58  ;;  %v536_v60 = vsub.f32 %v1726_v30, %v503_v59 }
 0x23e   : > { %v1411_v61 = vpop.eup %1410  ;;  %576 = vst.msk [vmem:[%s1779_s15 + $0x28] sm:$0xff] %vm544_vm2, %v563_v21 }
 0x23f   : > { %v1413_v46 = vpop.eup %1412  ;;  %550 = vst.msk [vmem:[%s1783_s20 + $0x28] sm:$0xff] %vm544_vm2, %v536_v60  ;;  %v505_v26 = vmul.f32 0.6931472, %v1411_v61 }
 0x240   : > { %v1415_v62 = vpop.eup %1414  ;;  %v564_v63 = vmul.f32 %v1413_v46, %v1764_v51 }
 0x241   : > { %v1417_v0 = vpop.eup %1416  ;;  %v537_v50 = vsub.f32 %v1735_v35, %v505_v26  ;;  %v507_v1 = vmul.f32 0.6931472, %v1415_v62 }
 0x242   : > { %v1419_v2 = vpop.eup %1418  ;;  %577 = vst.msk [vmem:[%s1779_s15 + $0x30] sm:$0xff] %vm544_vm2, %v564_v63  ;;  %v565_v30 = vmul.f32 %v1417_v0, %v1767_v52 }
 0x243   : > { %v1421_v3 = vpop.eup %1420  ;;  %551 = vst.msk [vmem:[%s1783_s20 + $0x30] sm:$0xff] %vm544_vm2, %v537_v50  ;;  %v538_v5 = vsub.f32 %v1743_v40, %v507_v1  ;;  %v517_v6 = vmul.f32 0.6931472, %v1419_v2  ;;  %594 = sbr.rel (!%p1638_p4) target bundleno = 647 (0x287), region = 36 }
 0x244   : > { %v1423_v51 = vpop.eup %1422  ;;  %578 = vst.msk [vmem:[%s1779_s15 + $0x38] sm:$0xff] %vm544_vm2, %v565_v30  ;;  %v570_v35 = vmul.f32 %v1421_v3, %v1770_v53 }
 0x245   : > { %v1425_v4 = vpop.eup %1424  ;;  %552 = vst.msk [vmem:[%s1783_s20 + $0x38] sm:$0xff] %vm544_vm2, %v538_v5  ;;  %v543_v7 = vsub.f32 %v1747_v43, %v517_v6  ;;  %v515_v9 = vmul.f32 0.6931472, %v1423_v51 }
 0x246   : > { %583 = vst.msk [vmem:[%s1779_s15 + $0x60] sm:$0xff] %vm544_vm2, %v570_v35  ;;  %v569_v52 = vmul.f32 %v1425_v4, %v1773_v54 }
 0x247   : > { %557 = vst.msk [vmem:[%s1783_s20 + $0x60] sm:$0xff] %vm544_vm2, %v543_v7  ;;  %v542_v40 = vsub.f32 %v1756_v48, %v515_v9 }
 0x248   : > { %582 = vst.msk [vmem:[%s1779_s15 + $0x58] sm:$0xff] %vm544_vm2, %v569_v52 }
 0x249   : > { %556 = vst.msk [vmem:[%s1783_s20 + $0x58] sm:$0xff] %vm544_vm2, %v542_v40 }
 0x24a   : > { %s2043_s21 = smov (!%p597_p8, %s596_s21), 13 }
 0x24b   : > { %s1108_s29 = sshll.u32 %s2043_s21, 7 }
 0x24c   : > { %p1111_p9 = scmp.eq.s32.totalorder %s1108_s29, 0 }
 0x24d   : > { %1426 = sdivrem.u32 (!%p1111_p9), %s2043_s21, 13 }
 0x24e   : > { %605 = sbr.rel (%p1111_p9) target bundleno = 647 (0x287), region = 40 }
 0x256   : > { %s1872_s30 = spop.drf %1426 }
 0x257   : > { %p1112_p10 = scmp.le.s32.totalorder %s1872_s30, 0 }
 0x258   : > { %s2033_s5 = smov (!%p1112_p10), %s1866_s27  ;;  %s2034_s6 = smov (!%p1112_p10), %s1783_s20 }
 0x259   : > { %1010 = sbr.rel (%p1112_p10) target bundleno = 618 (0x26a), region = 188  ;;  %s1881_s7 = smov (!%p1112_p10), 0  }
 0x25a   : > { %s1883_s8 = smov (!%p1112_p10), 0  }
 0x260 LB: >> { %v693_v43 = vld [vmem:[%s1528_s6] sm:$0xff]  ;;  %v695_v48 = vld [vmem:[%s1528_s6 + $0x8] sm:$0xff]  ;;  %v697_v53 = vld [vmem:[%s1528_s6 + $0x10] sm:$0xff]  ;;  %s719_s9 = sadd.s32 1, %s1532_s7  ;;  %s687_s8 = sadd.s32 1, %s1536_s8   ;;  %s1536_s8 = sphi %s1883_s8, %s687_s8   ;;  %s1532_s7 = sphi %s1881_s7, %s2035_s7   ;;  %s1528_s6 = sphi %s2034_s6, %s724_s6   ;;  %s1524_s5 = sphi %s2033_s5, %s725_s5  }
 0x261   : >> { %694 = vst [vmem:[%s1524_s5] sm:$0xff] %v693_v43  ;;  %696 = vst [vmem:[%s1524_s5 + $0x8] sm:$0xff] %v695_v48  ;;  %v699_v54 = vld [vmem:[%s1528_s6 + $0x18] sm:$0xff]  ;;  %v701_v11 = vld [vmem:[%s1528_s6 + $0x20] sm:$0xff]  ;;  %p720_p11 = scmp.ge.s32.totalorder %s719_s9, %s1872_s30  ;;  %p686_p12 = scmp.ge.s32.totalorder %s687_s8, %s1872_s30 }
 0x262   : >> { %698 = vst [vmem:[%s1524_s5 + $0x10] sm:$0xff] %v697_v53  ;;  %v703_v12 = vld [vmem:[%s1528_s6 + $0x28] sm:$0xff]  ;;  %700 = vst [vmem:[%s1524_s5 + $0x18] sm:$0xff] %v699_v54  ;;  %v705_v15 = vld [vmem:[%s1528_s6 + $0x30] sm:$0xff] }
 0x263   : >> { %702 = vst [vmem:[%s1524_s5 + $0x20] sm:$0xff] %v701_v11  ;;  %704 = vst [vmem:[%s1524_s5 + $0x28] sm:$0xff] %v703_v12  ;;  %v707_v16 = vld [vmem:[%s1528_s6 + $0x38] sm:$0xff]  ;;  %v709_v17 = vld [vmem:[%s1528_s6 + $0x40] sm:$0xff]  ;;  %s2045_s9 = smov (%p720_p11, %s719_s9), 0  ;;  %689 = sbr.rel (!%p686_p12) target bundleno = 608 (0x260), region = 194 }
 0x264   : >> { %706 = vst [vmem:[%s1524_s5 + $0x30] sm:$0xff] %v705_v15  ;;  %708 = vst [vmem:[%s1524_s5 + $0x38] sm:$0xff] %v707_v16  ;;  %v711_v18 = vld [vmem:[%s1528_s6 + $0x48] sm:$0xff]  ;;  %v713_v19 = vld [vmem:[%s1528_s6 + $0x50] sm:$0xff]  ;;  %s722_s10 = smul.u32 104, %s2045_s9  ;;  %s2035_s7 = smov %s2045_s9 }
 0x265   : >> { %710 = vst [vmem:[%s1524_s5 + $0x40] sm:$0xff] %v709_v17  ;;  %v715_v8 = vld [vmem:[%s1528_s6 + $0x58] sm:$0xff]  ;;  %712 = vst [vmem:[%s1524_s5 + $0x48] sm:$0xff] %v711_v18  ;;  %v717_v22 = vld [vmem:[%s1528_s6 + $0x60] sm:$0xff] }
 0x266   : >> { %714 = vst [vmem:[%s1524_s5 + $0x50] sm:$0xff] %v713_v19  ;;  %716 = vst [vmem:[%s1524_s5 + $0x58] sm:$0xff] %v715_v8  ;;  %s724_s6 = scalar_lea.vmem %s1783_s20, %s722_s10 [#allocation2]  }
 0x267   : >> { %718 = vst [vmem:[%s1524_s5 + $0x60] sm:$0xff] %v717_v22  ;;  %s725_s5 = scalar_lea.vmem %s1866_s27, %s722_s10  }
 0x26a PF: > { %1428 = sdivrem.u32 %s2043_s21, 13 }
 0x26b   : > { %s1113_s11 = smul.u32 104, %s1872_s30 }
 0x26d   : > { %s730_s12 = scalar_lea.vmem %s1783_s20, %s1113_s11 [#allocation2]   ;;  %s732_s13 = scalar_lea.vmem %s1866_s27, %s1113_s11  }
 0x273   : > { %s1429_s14 = spop.drf %1428 }
 0x274   : > { %p1115_p13 = scmp.le.s32.totalorder %s1429_s14, 0 }
 0x275   : > { %s1538_s17 = smov (!%p1115_p13), %s732_s13   ;;  %s1542_s24 = smov (!%p1115_p13), %s730_s12  }
 0x276   : > { %1024 = sbr.rel (%p1115_p13) target bundleno = 647 (0x287), region = 199  ;;  %s1546_s25 = smov (!%p1115_p13), 0  }
 0x277   : > { %s1550_s26 = smov (!%p1115_p13), 0  }
 0x27d LB: >> { %v742_v23 = vld [vmem:[%s1544_s24] sm:$0xff]  ;;  %s744_s29 = sadd.s32 1, %s1548_s25  ;;  %s736_s26 = sadd.s32 1, %s1552_s26   ;;  %s1552_s26 = sphi %s1550_s26, %s736_s26   ;;  %s1548_s25 = sphi %s1546_s25, %s1547_s25   ;;  %s1544_s24 = sphi %s1542_s24, %s749_s24   ;;  %s1540_s17 = sphi %s1538_s17, %s750_s17  }
 0x27e   : >> { %743 = vst [vmem:[%s1540_s17] sm:$0xff] %v742_v23  ;;  %p745_p0 = scmp.ge.s32.totalorder %s744_s29, %s1429_s14  ;;  %p735_p1 = scmp.ge.s32.totalorder %s736_s26, %s1429_s14 }
 0x280   : >> { %s2047_s29 = smov (%p745_p0, %s744_s29), 0  ;;  %738 = sbr.rel (!%p735_p1) target bundleno = 637 (0x27d), region = 205 }
 0x281   : >> { %s1116_s20 = sshll.u32 %s2047_s29, 3  ;;  %s1547_s25 = smov %s2047_s29  }
 0x282   : >> { %s749_s24 = scalar_lea.vmem %s730_s12, %s1116_s20 [#allocation2]   ;;  %s750_s17 = scalar_lea.vmem %s732_s13, %s1116_s20  }
 0x287 PF: > { %756 = sbr.rel (!%p1638_p4) target bundleno = 715 (0x2cb), region = 88  ;;  %s758_s21 = ssub.s32 (%p1638_p4), 25, %s1649_s28 }
 0x288   : > { %s1131_s27 = smul.u32 (%p1638_p4), 104, %s1626_s18  ;;  %p759_p2 = scmp.lt.s32.totalorder (%p1638_p4), %s758_s21, 13 }
 0x28a   : > { %s1945_s6 = scalar_lea.vmem (%p1638_p4), %s2031_s4, %s1131_s27  }
 0x28e   : > { %s2049_s21 = smov (!%p759_p2, %s758_s21), 13 }
 0x28f   : > { %s1118_s7 = sshll.u32 %s2049_s21, 7 }
 0x290   : > { %p1121_p3 = scmp.eq.s32.totalorder %s1118_s7, 0 }
 0x291   : > { %1430 = sdivrem.u32 (!%p1121_p3), %s2049_s21, 13 }
 0x292   : > { %767 = sbr.rel (%p1121_p3) target bundleno = 715 (0x2cb), region = 92 }
 0x29a   : > { %s1951_s23 = spop.drf %1430 }
 0x29b   : > { %p1122_p4 = scmp.le.s32.totalorder %s1951_s23, 0 }
 0x29c   : > { %s2036_s18 = smov (!%p1122_p4), %s1945_s6  ;;  %s2037_s28 = smov (!%p1122_p4), %s1779_s15 }
 0x29d   : > { %1038 = sbr.rel (%p1122_p4) target bundleno = 686 (0x2ae), region = 210  ;;  %s1960_s8 = smov (!%p1122_p4), 0  }
 0x29e   : > { %s1962_s9 = smov (!%p1122_p4), 0  }
 0x2a4 LB: >> { %v855_v24 = vld [vmem:[%s1560_s28] sm:$0xff]  ;;  %v857_v25 = vld [vmem:[%s1560_s28 + $0x8] sm:$0xff]  ;;  %v859_v27 = vld [vmem:[%s1560_s28 + $0x10] sm:$0xff]  ;;  %s881_s10 = sadd.s32 1, %s1564_s8  ;;  %s849_s9 = sadd.s32 1, %s1568_s9   ;;  %s1568_s9 = sphi %s1962_s9, %s849_s9   ;;  %s1564_s8 = sphi %s1960_s8, %s2038_s8   ;;  %s1560_s28 = sphi %s2037_s28, %s886_s28   ;;  %s1556_s18 = sphi %s2036_s18, %s887_s18  }
 0x2a5   : >> { %856 = vst [vmem:[%s1556_s18] sm:$0xff] %v855_v24  ;;  %858 = vst [vmem:[%s1556_s18 + $0x8] sm:$0xff] %v857_v25  ;;  %v861_v28 = vld [vmem:[%s1560_s28 + $0x18] sm:$0xff]  ;;  %v863_v29 = vld [vmem:[%s1560_s28 + $0x20] sm:$0xff]  ;;  %p882_p5 = scmp.ge.s32.totalorder %s881_s10, %s1951_s23  ;;  %p848_p6 = scmp.ge.s32.totalorder %s849_s9, %s1951_s23 }
 0x2a6   : >> { %860 = vst [vmem:[%s1556_s18 + $0x10] sm:$0xff] %v859_v27  ;;  %v865_v31 = vld [vmem:[%s1560_s28 + $0x28] sm:$0xff]  ;;  %862 = vst [vmem:[%s1556_s18 + $0x18] sm:$0xff] %v861_v28  ;;  %v867_v13 = vld [vmem:[%s1560_s28 + $0x30] sm:$0xff] }
 0x2a7   : >> { %864 = vst [vmem:[%s1556_s18 + $0x20] sm:$0xff] %v863_v29  ;;  %866 = vst [vmem:[%s1556_s18 + $0x28] sm:$0xff] %v865_v31  ;;  %v869_v32 = vld [vmem:[%s1560_s28 + $0x38] sm:$0xff]  ;;  %v871_v33 = vld [vmem:[%s1560_s28 + $0x40] sm:$0xff]  ;;  %s2051_s10 = smov (%p882_p5, %s881_s10), 0  ;;  %851 = sbr.rel (!%p848_p6) target bundleno = 676 (0x2a4), region = 216 }
 0x2a8   : >> { %868 = vst [vmem:[%s1556_s18 + $0x30] sm:$0xff] %v867_v13  ;;  %870 = vst [vmem:[%s1556_s18 + $0x38] sm:$0xff] %v869_v32  ;;  %v873_v34 = vld [vmem:[%s1560_s28 + $0x48] sm:$0xff]  ;;  %v875_v37 = vld [vmem:[%s1560_s28 + $0x50] sm:$0xff]  ;;  %s884_s11 = smul.u32 104, %s2051_s10  ;;  %s2038_s8 = smov %s2051_s10 }
 0x2a9   : >> { %872 = vst [vmem:[%s1556_s18 + $0x40] sm:$0xff] %v871_v33  ;;  %v877_v14 = vld [vmem:[%s1560_s28 + $0x58] sm:$0xff]  ;;  %874 = vst [vmem:[%s1556_s18 + $0x48] sm:$0xff] %v873_v34  ;;  %v879_v39 = vld [vmem:[%s1560_s28 + $0x60] sm:$0xff] }
 0x2aa   : >> { %876 = vst [vmem:[%s1556_s18 + $0x50] sm:$0xff] %v875_v37  ;;  %878 = vst [vmem:[%s1556_s18 + $0x58] sm:$0xff] %v877_v14  ;;  %s886_s28 = scalar_lea.vmem %s1779_s15, %s884_s11 [#allocation3]  }
 0x2ab   : >> { %880 = vst [vmem:[%s1556_s18 + $0x60] sm:$0xff] %v879_v39  ;;  %s887_s18 = scalar_lea.vmem %s1945_s6, %s884_s11  }
 0x2ae PF: > { %1432 = sdivrem.u32 %s2049_s21, 13 }
 0x2af   : > { %s1123_s12 = smul.u32 104, %s1951_s23 }
 0x2b1   : > { %s892_s13 = scalar_lea.vmem %s1779_s15, %s1123_s12 [#allocation3]   ;;  %s894_s14 = scalar_lea.vmem %s1945_s6, %s1123_s12  }
 0x2b7   : > { %s1433_s17 = spop.drf %1432 }
 0x2b8   : > { %p1125_p7 = scmp.le.s32.totalorder %s1433_s17, 0 }
 0x2b9   : > { %s1570_s24 = smov (!%p1125_p7), %s894_s14   ;;  %s1574_s25 = smov (!%p1125_p7), %s892_s13  }
 0x2ba   : > { %1052 = sbr.rel (%p1125_p7) target bundleno = 715 (0x2cb), region = 221  ;;  %s1578_s26 = smov (!%p1125_p7), 0  }
 0x2bb   : > { %s1582_s29 = smov (!%p1125_p7), 0  }
 0x2c1 LB: >> { %v904_v41 = vld [vmem:[%s1576_s25] sm:$0xff]  ;;  %s906_s20 = sadd.s32 1, %s1580_s26  ;;  %s898_s29 = sadd.s32 1, %s1584_s29   ;;  %s1584_s29 = sphi %s1582_s29, %s898_s29   ;;  %s1580_s26 = sphi %s1578_s26, %s1579_s26   ;;  %s1576_s25 = sphi %s1574_s25, %s911_s25   ;;  %s1572_s24 = sphi %s1570_s24, %s912_s24  }
 0x2c2   : >> { %905 = vst [vmem:[%s1572_s24] sm:$0xff] %v904_v41  ;;  %p907_p8 = scmp.ge.s32.totalorder %s906_s20, %s1433_s17  ;;  %p897_p9 = scmp.ge.s32.totalorder %s898_s29, %s1433_s17 }
 0x2c4   : >> { %s2053_s20 = smov (%p907_p8, %s906_s20), 0  ;;  %900 = sbr.rel (!%p897_p9) target bundleno = 705 (0x2c1), region = 227 }
 0x2c5   : >> { %s1126_s15 = sshll.u32 %s2053_s20, 3  ;;  %s1579_s26 = smov %s2053_s20  }
 0x2c6   : >> { %s911_s25 = scalar_lea.vmem %s892_s13, %s1126_s15 [#allocation3]   ;;  %s912_s24 = scalar_lea.vmem %s894_s14, %s1126_s15  }
 0x2cb PF: > { %p12_p10 = scmp.ge.s32.totalorder %s1628_s19, 4   ;;  %s2039_s15 = smov %s1516_s16 }
 0x2cc   : > { %s2040_s16 = smov %s1636_s22  ;;  %s2041_s17 = smov %s1628_s19 }
 0x2cd   :  { %14 = sbr.rel (!%p12_p10) target bundleno = 2 (0x2), region = 238 }

</bundles_post_ra>
